<compile_context>
chip_gen: v7x
topology: tpu7x:2x2x1
jax: 0.10.0
libtpu: 0.0.40
codegen_flags: <defaults>
</compile_context>

<pallas_src>
import functools
import math

import jax
import jax.numpy as jnp
from jax.experimental import pallas as pl
from jax.experimental.pallas import tpu as pltpu


# ---------------------------------------------------------------------------
# helpers
# ---------------------------------------------------------------------------
def _pick_tile(n, cap, align):
    """Largest tile <= cap that divides n and is `align`-aligned (or == n)."""
    for t in range(min(cap, n), 0, -1):
        if n % t == 0 and (t % align == 0 or t == n):
            return t
    return n


# ---------------------------------------------------------------------------
# Kernel 1: self-attention sublayer (optional pre-LN + MHA + residual)
# ---------------------------------------------------------------------------
def _attn_kernel(x_ref, mask_ref, g_ref, b_ref, wq_ref, bq_ref, wk_ref, bk_ref,
                 wv_ref, bv_ref, wo_ref, bo_ref, o_ref, *, num_heads, apply_ln):
    S, D = x_ref.shape[1], x_ref.shape[2]
    dph = D // num_heads

    xf = x_ref[0].astype(jnp.float32)                     # (S, D) residual src

    if apply_ln:                                          # iter != 0 path
        mean = jnp.mean(xf, axis=-1, keepdims=True)
        var = jnp.mean(jnp.square(xf - mean), axis=-1, keepdims=True)
        xn = (xf - mean) * jax.lax.rsqrt(var + 1e-6)
        xn = xn * g_ref[...] + b_ref[...]
    else:                                                 # iter == 0 path
        xn = xf

    # Q/K/V projections (cast activations to weight dtype for the MXU).
    xn_c = xn.astype(wq_ref.dtype)
    q = jnp.dot(xn_c, wq_ref[...], preferred_element_type=jnp.float32) + bq_ref[...]
    k = jnp.dot(xn_c, wk_ref[...], preferred_element_type=jnp.float32) + bk_ref[...]
    v = jnp.dot(xn_c, wv_ref[...], preferred_element_type=jnp.float32) + bv_ref[...]

    masked = mask_ref[0] != 0                             # (1, S), broadcasts
    scale = 1.0 / math.sqrt(dph)

    # Accumulate final_linear directly: concat_h(ctx_h) @ Wo == sum_h ctx_h @ Wo_rows_h
    out = jnp.zeros((S, D), jnp.float32) + bo_ref[...]
    for h in range(num_heads):                            # static unroll over heads
        lo, hi = h * dph, (h + 1) * dph
        qh = q[:, lo:hi] * scale
        kh = k[:, lo:hi]
        vh = v[:, lo:hi]
        s = jnp.dot(qh, kh.T, preferred_element_type=jnp.float32)    # (S, S)
        s = jnp.where(masked, -jnp.inf, s)
        p = jnp.exp(s - jnp.max(s, axis=-1, keepdims=True))
        p = p / jnp.sum(p, axis=-1, keepdims=True)
        # attention dropout: eval mode -> identity
        ctx = jnp.dot(p, vh, preferred_element_type=jnp.float32)     # (S, dph)
        out = out + jnp.dot(ctx.astype(wo_ref.dtype), wo_ref[lo:hi, :],
                            preferred_element_type=jnp.float32)

    # residual dropout: eval mode -> identity
    o_ref[0] = (out + xf).astype(o_ref.dtype)


def attention_sublayer(x, mask, ln_g, ln_b, wq, bq, wk, bk, wv, bv, wo, bo, *,
                       num_heads, apply_ln):
    B, S, D = x.shape
    assert D % num_heads == 0
    mask3 = mask.astype(jnp.int32).reshape(B, 1, S)

    batch3 = pl.BlockSpec((1, S, D), lambda bi: (bi, 0, 0))
    full2 = lambda shape: pl.BlockSpec(shape, lambda bi: (0, 0))
    kernel = functools.partial(_attn_kernel, num_heads=num_heads,
                               apply_ln=apply_ln)

    return pl.pallas_call(
        kernel,
        out_shape=jax.ShapeDtypeStruct((B, S, D), x.dtype),
        grid_spec=pltpu.PrefetchScalarGridSpec(
            num_scalar_prefetch=0,
            grid=(B,),
            in_specs=[
                batch3,                                        # inputs
                pl.BlockSpec((1, 1, S), lambda bi: (bi, 0, 0)),  # key mask
                full2((1, D)), full2((1, D)),                  # LN gamma / beta
                full2((D, D)), full2((1, D)),                  # Wq, bq
                full2((D, D)), full2((1, D)),                  # Wk, bk
                full2((D, D)), full2((1, D)),                  # Wv, bv
                full2((D, D)), full2((1, D)),                  # Wo, bo
            ],
            out_specs=batch3,
        ),
        compiler_params=pltpu.CompilerParams(
            dimension_semantics=("parallel",)),
    )(x, mask3, ln_g.reshape(1, D), ln_b.reshape(1, D),
      wq, bq.reshape(1, D), wk, bk.reshape(1, D), wv, bv.reshape(1, D),
      wo, bo.reshape(1, D))


# ---------------------------------------------------------------------------
# Kernel 2: positionwise FFN sublayer (pre-LN + GELU FFN + residual)
# ---------------------------------------------------------------------------
def _ffn_kernel(x_ref, gamma_ref, beta_ref, w1_ref, b1_ref, w2_ref, b2_ref,
                o_ref, acc_ref, xn_ref):
    k = pl.program_id(1)

    @pl.when(k == 0)
    def _():
        xf = x_ref[...].astype(jnp.float32)
        mean = jnp.mean(xf, axis=-1, keepdims=True)
        var = jnp.mean(jnp.square(xf - mean), axis=-1, keepdims=True)
        xn = (xf - mean) * jax.lax.rsqrt(var + 1e-6)
        xn_ref[...] = xn * gamma_ref[...] + beta_ref[...]
        acc_ref[...] = jnp.zeros_like(acc_ref)

    # w_1 slab (d_model -> t_ff) + tanh-GELU (f32 elementwise)
    h = jnp.dot(xn_ref[...].astype(w1_ref.dtype), w1_ref[...],
                preferred_element_type=jnp.float32) + b1_ref[...]
    c = math.sqrt(2.0 / math.pi)
    h = 0.5 * h * (1.0 + jnp.tanh(c * (h + 0.044715 * h * h * h)))
    # dropout_1: eval mode -> identity

    # w_2 slab (t_ff -> d_model), accumulated in f32 scratch
    acc_ref[...] += jnp.dot(h.astype(w2_ref.dtype), w2_ref[...],
                            preferred_element_type=jnp.float32)

    @pl.when(k == pl.num_programs(1) - 1)
    def _():
        # dropout_2: eval mode -> identity; then residual
        out = acc_ref[...] + b2_ref[...] + x_ref[...].astype(jnp.float32)
        o_ref[...] = out.astype(o_ref.dtype)


def positionwise_ffn(x, gamma, beta, w1, b1, w2, b2, *,
                     row_tile_cap=256, ff_tile_cap=512):
    """x: [B, S, d_model]; weights stored as (in, out) so kernel does x @ W."""
    B, S, D = x.shape
    d_ff = w1.shape[1]
    N = B * S
    tm = _pick_tile(N, row_tile_cap, 8)        # large row tile (multiple of 8)
    tf = _pick_tile(d_ff, ff_tile_cap, 128)    # lane-dense d_ff tile
    x2 = x.reshape(N, D)

    out = pl.pallas_call(
        _ffn_kernel,
        out_shape=jax.ShapeDtypeStruct((N, D), x.dtype),
        grid_spec=pltpu.PrefetchScalarGridSpec(
            num_scalar_prefetch=0,
            grid=(N // tm, d_ff // tf),
            in_specs=[
                pl.BlockSpec((tm, D), lambda i, k: (i, 0)),   # x rows (constant over k)
                pl.BlockSpec((1, D), lambda i, k: (0, 0)),    # LN gamma
                pl.BlockSpec((1, D), lambda i, k: (0, 0)),    # LN beta
                pl.BlockSpec((D, tf), lambda i, k: (0, k)),   # w_1 slab
                pl.BlockSpec((1, tf), lambda i, k: (0, k)),   # b_1 slab
                pl.BlockSpec((tf, D), lambda i, k: (k, 0)),   # w_2 slab
                pl.BlockSpec((1, D), lambda i, k: (0, 0)),    # b_2
            ],
            out_specs=pl.BlockSpec((tm, D), lambda i, k: (i, 0)),
            scratch_shapes=[pltpu.VMEM((tm, D), jnp.float32),   # accumulator
                            pltpu.VMEM((tm, D), jnp.float32)],  # LN(x) cache
        ),
        compiler_params=pltpu.CompilerParams(
            dimension_semantics=("parallel", "arbitrary")),
    )(x2, gamma.reshape(1, D), beta.reshape(1, D),
      w1, b1.reshape(1, d_ff), w2, b2.reshape(1, D))
    return out.reshape(B, S, D)


# ---------------------------------------------------------------------------
# Full layer wrapper (matches TransformerEncoderLayer.forward semantics)
# ---------------------------------------------------------------------------
def transformer_encoder_layer(iter_, query, inputs, mask, params, *, num_heads):
    """forward(iter, query, inputs, mask). `query` is unused by the module.

    mask: [B, S], nonzero marks keys that receive no attention (padding).
    Linear weights are stored (in, out), i.e. the transpose of torch's layout.
    """
    del query  # unused by the reference module
    attn_out = attention_sublayer(
        inputs, mask,
        params["ln1_g"], params["ln1_b"],
        params["wq"], params["bq"], params["wk"], params["bk"],
        params["wv"], params["bv"], params["wo"], params["bo"],
        num_heads=num_heads, apply_ln=(iter_ != 0))
    return positionwise_ffn(
        attn_out, params["ln2_g"], params["ln2_b"],
        params["w1"], params["b1"], params["w2"], params["b2"])


# ---------------------------------------------------------------------------
# Pure-JAX reference for correctness checking
# ---------------------------------------------------------------------------
def _reference(iter_, x, mask, p, *, num_heads):
    xf = x.astype(jnp.float32)

    def ln(v, g, b):
        m = jnp.mean(v, axis=-1, keepdims=True)
        var = jnp.mean(jnp.square(v - m), axis=-1, keepdims=True)
        return (v - m) / jnp.sqrt(var + 1e-6) * g + b

    xn = ln(xf, p["ln1_g"], p["ln1_b"]) if iter_ != 0 else xf
    B, S, D = x.shape
    dph = D // num_heads
    q = (xn @ p["wq"] + p["bq"]).reshape(B, S, num_heads, dph).transpose(0, 2, 1, 3)
    k = (xn @ p["wk"] + p["bk"]).reshape(B, S, num_heads, dph).transpose(0, 2, 1, 3)
    v = (xn @ p["wv"] + p["bv"]).reshape(B, S, num_heads, dph).transpose(0, 2, 1, 3)
    s = jnp.einsum("bhqd,bhkd->bhqk", q / math.sqrt(dph), k)
    s = jnp.where(mask[:, None, None, :] != 0, -jnp.inf, s)
    a = jax.nn.softmax(s, axis=-1)
    ctx = jnp.einsum("bhqk,bhkd->bhqd", a, v).transpose(0, 2, 1, 3).reshape(B, S, D)
    out1 = ctx @ p["wo"] + p["bo"] + xf

    h = ln(out1, p["ln2_g"], p["ln2_b"]) @ p["w1"] + p["b1"]
    c = math.sqrt(2.0 / math.pi)
    h = 0.5 * h * (1.0 + jnp.tanh(c * (h + 0.044715 * h ** 3)))
    return (h @ p["w2"] + p["b2"] + out1).astype(x.dtype)


# ---------------------------------------------------------------------------
if __name__ == "__main__":
    key = jax.random.PRNGKey(0)
    B, S, d_model, heads, d_ff = 2, 8, 32, 4, 64
    ks = jax.random.split(key, 16)

    x = jax.random.normal(ks[0], (B, S, d_model), jnp.float32)
    # key-padding mask: 1 = masked. Mask the last two key positions of batch 1.
    mask = jnp.zeros((B, S), jnp.int32).at[1, S - 2:].set(1)

    def xavier(k, fan_in, fan_out):
        lim = math.sqrt(6.0 / (fan_in + fan_out))
        return jax.random.uniform(k, (fan_in, fan_out), jnp.float32, -lim, lim)

    params = dict(
        ln1_g=1.0 + 0.1 * jax.random.normal(ks[1], (d_model,), jnp.float32),
        ln1_b=0.1 * jax.random.normal(ks[2], (d_model,), jnp.float32),
        wq=xavier(ks[3], d_model, d_model),
        bq=0.1 * jax.random.normal(ks[4], (d_model,), jnp.float32),
        wk=xavier(ks[5], d_model, d_model),
        bk=0.1 * jax.random.normal(ks[6], (d_model,), jnp.float32),
        wv=xavier(ks[7], d_model, d_model),
        bv=0.1 * jax.random.normal(ks[8], (d_model,), jnp.float32),
        wo=xavier(ks[9], d_model, d_model),
        bo=0.1 * jax.random.normal(ks[10], (d_model,), jnp.float32),
        ln2_g=1.0 + 0.1 * jax.random.normal(ks[11], (d_model,), jnp.float32),
        ln2_b=0.1 * jax.random.normal(ks[12], (d_model,), jnp.float32),
        w1=xavier(ks[13], d_model, d_ff),
        b1=0.1 * jax.random.normal(ks[14], (d_ff,), jnp.float32),
        w2=xavier(ks[15], d_ff, d_model),
        b2=jnp.zeros((d_model,), jnp.float32),
    )

    for it in (0, 1):  # exercise both the iter==0 (no LN) and iter!=0 paths
        out = transformer_encoder_layer(it, None, x, mask, params, num_heads=heads)
        out = jax.block_until_ready(out)
        ref = _reference(it, x, mask, params, num_heads=heads)
        assert out.shape == x.shape
        assert jnp.allclose(out, ref, atol=1e-3, rtol=1e-3), f"mismatch (iter={it})"

    print("KERNEL_OK")
</pallas_src>

<mosaic_0001>
module attributes {stable_mosaic.version = 11 : i64} {
  func.func @_attn_kernel(%arg0: i32, %arg1: memref<1x8x32xf32, #tpu.memory_space<vmem>>, %arg2: memref<1x1x8xi32, #tpu.memory_space<vmem>>, %arg3: memref<1x32xf32, #tpu.memory_space<vmem>>, %arg4: memref<1x32xf32, #tpu.memory_space<vmem>>, %arg5: memref<32x32xf32, #tpu.memory_space<vmem>>, %arg6: memref<1x32xf32, #tpu.memory_space<vmem>>, %arg7: memref<32x32xf32, #tpu.memory_space<vmem>>, %arg8: memref<1x32xf32, #tpu.memory_space<vmem>>, %arg9: memref<32x32xf32, #tpu.memory_space<vmem>>, %arg10: memref<1x32xf32, #tpu.memory_space<vmem>>, %arg11: memref<32x32xf32, #tpu.memory_space<vmem>>, %arg12: memref<1x32xf32, #tpu.memory_space<vmem>>, %arg13: memref<1x8x32xf32, #tpu.memory_space<vmem>>) attributes {dimension_semantics = [#tpu.dimension_semantics<parallel>], iteration_bounds = array<i64: 2>, scalar_prefetch = 0 : i64, scratch_operands = 0 : i64, tpu.core_type = #tpu.core_type<tc>, window_params = [{transform_indices = @transform_0, window_bounds = array<i64: 1, 8, 32>}, {transform_indices = @transform_1, window_bounds = array<i64: 1, 1, 8>}, {pipeline_mode = #tpu.pipeline_mode<synchronous>, transform_indices = @transform_2, window_bounds = array<i64: 1, 32>}, {pipeline_mode = #tpu.pipeline_mode<synchronous>, transform_indices = @transform_3, window_bounds = array<i64: 1, 32>}, {pipeline_mode = #tpu.pipeline_mode<synchronous>, transform_indices = @transform_4, window_bounds = array<i64: 32, 32>}, {pipeline_mode = #tpu.pipeline_mode<synchronous>, transform_indices = @transform_5, window_bounds = array<i64: 1, 32>}, {pipeline_mode = #tpu.pipeline_mode<synchronous>, transform_indices = @transform_6, window_bounds = array<i64: 32, 32>}, {pipeline_mode = #tpu.pipeline_mode<synchronous>, transform_indices = @transform_7, window_bounds = array<i64: 1, 32>}, {pipeline_mode = #tpu.pipeline_mode<synchronous>, transform_indices = @transform_8, window_bounds = array<i64: 32, 32>}, {pipeline_mode = #tpu.pipeline_mode<synchronous>, transform_indices = @transform_9, window_bounds = array<i64: 1, 32>}, {pipeline_mode = #tpu.pipeline_mode<synchronous>, transform_indices = @transform_10, window_bounds = array<i64: 32, 32>}, {pipeline_mode = #tpu.pipeline_mode<synchronous>, transform_indices = @transform_11, window_bounds = array<i64: 1, 32>}, {transform_indices = @transform_12, window_bounds = array<i64: 1, 8, 32>}]} {
    %c0 = arith.constant 0 : index
    %c0_0 = arith.constant 0 : index
    %c0_1 = arith.constant 0 : index
    %0 = vector.load %arg1[%c0, %c0_0, %c0_1] : memref<1x8x32xf32, #tpu.memory_space<vmem>>, vector<1x8x32xf32>
    %1 = vector.shape_cast %0 : vector<1x8x32xf32> to vector<8x32xf32>
    %c0_2 = arith.constant 0 : index
    %c0_3 = arith.constant 0 : index
    %2 = vector.load %arg5[%c0_2, %c0_3] : memref<32x32xf32, #tpu.memory_space<vmem>>, vector<32x32xf32>
    %cst = arith.constant dense<0.000000e+00> : vector<8x32xf32>
    %3 = tpu.matmul %1, %2, %cst {dimension_numbers = #tpu.dot_dimension_numbers<[1], [0], [0], [1], [0, 0, 1, 1], [], []>} : vector<8x32xf32>, vector<32x32xf32>, vector<8x32xf32> -> vector<8x32xf32>
    %c0_4 = arith.constant 0 : index
    %c0_5 = arith.constant 0 : index
    %4 = vector.load %arg6[%c0_4, %c0_5] : memref<1x32xf32, #tpu.memory_space<vmem>>, vector<1x32xf32>
    %5 = vector.broadcast %4 : vector<1x32xf32> to vector<8x32xf32>
    %6 = arith.addf %3, %5 : vector<8x32xf32>
    %c0_6 = arith.constant 0 : index
    %c0_7 = arith.constant 0 : index
    %7 = vector.load %arg7[%c0_6, %c0_7] : memref<32x32xf32, #tpu.memory_space<vmem>>, vector<32x32xf32>
    %cst_8 = arith.constant dense<0.000000e+00> : vector<8x32xf32>
    %8 = tpu.matmul %1, %7, %cst_8 {dimension_numbers = #tpu.dot_dimension_numbers<[1], [0], [0], [1], [0, 0, 1, 1], [], []>} : vector<8x32xf32>, vector<32x32xf32>, vector<8x32xf32> -> vector<8x32xf32>
    %c0_9 = arith.constant 0 : index
    %c0_10 = arith.constant 0 : index
    %9 = vector.load %arg8[%c0_9, %c0_10] : memref<1x32xf32, #tpu.memory_space<vmem>>, vector<1x32xf32>
    %10 = vector.broadcast %9 : vector<1x32xf32> to vector<8x32xf32>
    %11 = arith.addf %8, %10 : vector<8x32xf32>
    %c0_11 = arith.constant 0 : index
    %c0_12 = arith.constant 0 : index
    %12 = vector.load %arg9[%c0_11, %c0_12] : memref<32x32xf32, #tpu.memory_space<vmem>>, vector<32x32xf32>
    %cst_13 = arith.constant dense<0.000000e+00> : vector<8x32xf32>
    %13 = tpu.matmul %1, %12, %cst_13 {dimension_numbers = #tpu.dot_dimension_numbers<[1], [0], [0], [1], [0, 0, 1, 1], [], []>} : vector<8x32xf32>, vector<32x32xf32>, vector<8x32xf32> -> vector<8x32xf32>
    %c0_14 = arith.constant 0 : index
    %c0_15 = arith.constant 0 : index
    %14 = vector.load %arg10[%c0_14, %c0_15] : memref<1x32xf32, #tpu.memory_space<vmem>>, vector<1x32xf32>
    %15 = vector.broadcast %14 : vector<1x32xf32> to vector<8x32xf32>
    %16 = arith.addf %13, %15 : vector<8x32xf32>
    %c0_16 = arith.constant 0 : index
    %c0_17 = arith.constant 0 : index
    %c0_18 = arith.constant 0 : index
    %17 = vector.load %arg2[%c0_16, %c0_17, %c0_18] : memref<1x1x8xi32, #tpu.memory_space<vmem>>, vector<1x1x8xi32>
    %18 = vector.shape_cast %17 : vector<1x1x8xi32> to vector<1x8xi32>
    %c0_i32 = arith.constant 0 : i32
    %19 = vector.broadcast %c0_i32 : i32 to vector<1x8xi32>
    %20 = arith.cmpi ne, %18, %19 : vector<1x8xi32>
    %cst_19 = arith.constant 0.000000e+00 : f32
    %21 = vector.broadcast %cst_19 : f32 to vector<8x32xf32>
    %c0_20 = arith.constant 0 : index
    %c0_21 = arith.constant 0 : index
    %22 = vector.load %arg12[%c0_20, %c0_21] : memref<1x32xf32, #tpu.memory_space<vmem>>, vector<1x32xf32>
    %23 = vector.broadcast %22 : vector<1x32xf32> to vector<8x32xf32>
    %24 = arith.addf %21, %23 : vector<8x32xf32>
    %25 = vector.extract_strided_slice %6 {offsets = [0, 0], sizes = [8, 8], strides = [1, 1]} : vector<8x32xf32> to vector<8x8xf32>
    %cst_22 = arith.constant 0.353553385 : f32
    %26 = vector.broadcast %cst_22 : f32 to vector<8x8xf32>
    %27 = arith.mulf %25, %26 : vector<8x8xf32>
    %28 = vector.extract_strided_slice %11 {offsets = [0, 0], sizes = [8, 8], strides = [1, 1]} : vector<8x32xf32> to vector<8x8xf32>
    %29 = vector.extract_strided_slice %16 {offsets = [0, 0], sizes = [8, 8], strides = [1, 1]} : vector<8x32xf32> to vector<8x8xf32>
    %30 = tpu.transpose %28, [1, 0] : vector<8x8xf32> -> vector<8x8xf32>
    %cst_23 = arith.constant dense<0.000000e+00> : vector<8x8xf32>
    %31 = tpu.matmul %27, %30, %cst_23 {dimension_numbers = #tpu.dot_dimension_numbers<[1], [0], [0], [1], [0, 0, 1, 1], [], []>} : vector<8x8xf32>, vector<8x8xf32>, vector<8x8xf32> -> vector<8x8xf32>
    %cst_24 = arith.constant 0xFF800000 : f32
    %32 = vector.shape_cast %20 : vector<1x8xi1> to vector<1x8xi1>
    %33 = vector.broadcast %32 : vector<1x8xi1> to vector<8x8xi1>
    %34 = vector.broadcast %cst_24 : f32 to vector<8x8xf32>
    %35 = arith.select %33, %34, %31 : vector<8x8xi1>, vector<8x8xf32>
    %cst_25 = arith.constant dense<0xFF800000> : vector<8xf32>
    %36 = vector.multi_reduction <maximumf>, %35, %cst_25 [1] : vector<8x8xf32> to vector<8xf32>
    %37 = vector.shape_cast %36 : vector<8xf32> to vector<8x1xf32>
    %38 = vector.broadcast %37 : vector<8x1xf32> to vector<8x8xf32>
    %39 = arith.subf %35, %38 : vector<8x8xf32>
    %40 = math.exp %39 : vector<8x8xf32>
    %cst_26 = arith.constant dense<0.000000e+00> : vector<8xf32>
    %41 = vector.multi_reduction <add>, %40, %cst_26 [1] : vector<8x8xf32> to vector<8xf32>
    %42 = vector.shape_cast %41 : vector<8xf32> to vector<8x1xf32>
    %43 = vector.broadcast %42 : vector<8x1xf32> to vector<8x8xf32>
    %44 = arith.divf %40, %43 : vector<8x8xf32>
    %cst_27 = arith.constant dense<0.000000e+00> : vector<8x8xf32>
    %45 = tpu.matmul %44, %29, %cst_27 {dimension_numbers = #tpu.dot_dimension_numbers<[1], [0], [0], [1], [0, 0, 1, 1], [], []>} : vector<8x8xf32>, vector<8x8xf32>, vector<8x8xf32> -> vector<8x8xf32>
    %c0_28 = arith.constant 0 : index
    %c0_29 = arith.constant 0 : index
    %46 = vector.load %arg11[%c0_28, %c0_29] : memref<32x32xf32, #tpu.memory_space<vmem>>, vector<8x32xf32>
    %cst_30 = arith.constant dense<0.000000e+00> : vector<8x32xf32>
    %47 = tpu.matmul %45, %46, %cst_30 {dimension_numbers = #tpu.dot_dimension_numbers<[1], [0], [0], [1], [0, 0, 1, 1], [], []>} : vector<8x8xf32>, vector<8x32xf32>, vector<8x32xf32> -> vector<8x32xf32>
    %48 = arith.addf %24, %47 : vector<8x32xf32>
    %49 = vector.extract_strided_slice %6 {offsets = [0, 8], sizes = [8, 8], strides = [1, 1]} : vector<8x32xf32> to vector<8x8xf32>
    %cst_31 = arith.constant 0.353553385 : f32
    %50 = vector.broadcast %cst_31 : f32 to vector<8x8xf32>
    %51 = arith.mulf %49, %50 : vector<8x8xf32>
    %52 = vector.extract_strided_slice %11 {offsets = [0, 8], sizes = [8, 8], strides = [1, 1]} : vector<8x32xf32> to vector<8x8xf32>
    %53 = vector.extract_strided_slice %16 {offsets = [0, 8], sizes = [8, 8], strides = [1, 1]} : vector<8x32xf32> to vector<8x8xf32>
    %54 = tpu.transpose %52, [1, 0] : vector<8x8xf32> -> vector<8x8xf32>
    %cst_32 = arith.constant dense<0.000000e+00> : vector<8x8xf32>
    %55 = tpu.matmul %51, %54, %cst_32 {dimension_numbers = #tpu.dot_dimension_numbers<[1], [0], [0], [1], [0, 0, 1, 1], [], []>} : vector<8x8xf32>, vector<8x8xf32>, vector<8x8xf32> -> vector<8x8xf32>
    %cst_33 = arith.constant 0xFF800000 : f32
    %56 = vector.shape_cast %20 : vector<1x8xi1> to vector<1x8xi1>
    %57 = vector.broadcast %56 : vector<1x8xi1> to vector<8x8xi1>
    %58 = vector.broadcast %cst_33 : f32 to vector<8x8xf32>
    %59 = arith.select %57, %58, %55 : vector<8x8xi1>, vector<8x8xf32>
    %cst_34 = arith.constant dense<0xFF800000> : vector<8xf32>
    %60 = vector.multi_reduction <maximumf>, %59, %cst_34 [1] : vector<8x8xf32> to vector<8xf32>
    %61 = vector.shape_cast %60 : vector<8xf32> to vector<8x1xf32>
    %62 = vector.broadcast %61 : vector<8x1xf32> to vector<8x8xf32>
    %63 = arith.subf %59, %62 : vector<8x8xf32>
    %64 = math.exp %63 : vector<8x8xf32>
    %cst_35 = arith.constant dense<0.000000e+00> : vector<8xf32>
    %65 = vector.multi_reduction <add>, %64, %cst_35 [1] : vector<8x8xf32> to vector<8xf32>
    %66 = vector.shape_cast %65 : vector<8xf32> to vector<8x1xf32>
    %67 = vector.broadcast %66 : vector<8x1xf32> to vector<8x8xf32>
    %68 = arith.divf %64, %67 : vector<8x8xf32>
    %cst_36 = arith.constant dense<0.000000e+00> : vector<8x8xf32>
    %69 = tpu.matmul %68, %53, %cst_36 {dimension_numbers = #tpu.dot_dimension_numbers<[1], [0], [0], [1], [0, 0, 1, 1], [], []>} : vector<8x8xf32>, vector<8x8xf32>, vector<8x8xf32> -> vector<8x8xf32>
    %c8 = arith.constant 8 : index
    %c0_37 = arith.constant 0 : index
    %70 = vector.load %arg11[%c8, %c0_37] : memref<32x32xf32, #tpu.memory_space<vmem>>, vector<8x32xf32>
    %cst_38 = arith.constant dense<0.000000e+00> : vector<8x32xf32>
    %71 = tpu.matmul %69, %70, %cst_38 {dimension_numbers = #tpu.dot_dimension_numbers<[1], [0], [0], [1], [0, 0, 1, 1], [], []>} : vector<8x8xf32>, vector<8x32xf32>, vector<8x32xf32> -> vector<8x32xf32>
    %72 = arith.addf %48, %71 : vector<8x32xf32>
    %73 = vector.extract_strided_slice %6 {offsets = [0, 16], sizes = [8, 8], strides = [1, 1]} : vector<8x32xf32> to vector<8x8xf32>
    %cst_39 = arith.constant 0.353553385 : f32
    %74 = vector.broadcast %cst_39 : f32 to vector<8x8xf32>
    %75 = arith.mulf %73, %74 : vector<8x8xf32>
    %76 = vector.extract_strided_slice %11 {offsets = [0, 16], sizes = [8, 8], strides = [1, 1]} : vector<8x32xf32> to vector<8x8xf32>
    %77 = vector.extract_strided_slice %16 {offsets = [0, 16], sizes = [8, 8], strides = [1, 1]} : vector<8x32xf32> to vector<8x8xf32>
    %78 = tpu.transpose %76, [1, 0] : vector<8x8xf32> -> vector<8x8xf32>
    %cst_40 = arith.constant dense<0.000000e+00> : vector<8x8xf32>
    %79 = tpu.matmul %75, %78, %cst_40 {dimension_numbers = #tpu.dot_dimension_numbers<[1], [0], [0], [1], [0, 0, 1, 1], [], []>} : vector<8x8xf32>, vector<8x8xf32>, vector<8x8xf32> -> vector<8x8xf32>
    %cst_41 = arith.constant 0xFF800000 : f32
    %80 = vector.shape_cast %20 : vector<1x8xi1> to vector<1x8xi1>
    %81 = vector.broadcast %80 : vector<1x8xi1> to vector<8x8xi1>
    %82 = vector.broadcast %cst_41 : f32 to vector<8x8xf32>
    %83 = arith.select %81, %82, %79 : vector<8x8xi1>, vector<8x8xf32>
    %cst_42 = arith.constant dense<0xFF800000> : vector<8xf32>
    %84 = vector.multi_reduction <maximumf>, %83, %cst_42 [1] : vector<8x8xf32> to vector<8xf32>
    %85 = vector.shape_cast %84 : vector<8xf32> to vector<8x1xf32>
    %86 = vector.broadcast %85 : vector<8x1xf32> to vector<8x8xf32>
    %87 = arith.subf %83, %86 : vector<8x8xf32>
    %88 = math.exp %87 : vector<8x8xf32>
    %cst_43 = arith.constant dense<0.000000e+00> : vector<8xf32>
    %89 = vector.multi_reduction <add>, %88, %cst_43 [1] : vector<8x8xf32> to vector<8xf32>
    %90 = vector.shape_cast %89 : vector<8xf32> to vector<8x1xf32>
    %91 = vector.broadcast %90 : vector<8x1xf32> to vector<8x8xf32>
    %92 = arith.divf %88, %91 : vector<8x8xf32>
    %cst_44 = arith.constant dense<0.000000e+00> : vector<8x8xf32>
    %93 = tpu.matmul %92, %77, %cst_44 {dimension_numbers = #tpu.dot_dimension_numbers<[1], [0], [0], [1], [0, 0, 1, 1], [], []>} : vector<8x8xf32>, vector<8x8xf32>, vector<8x8xf32> -> vector<8x8xf32>
    %c16 = arith.constant 16 : index
    %c0_45 = arith.constant 0 : index
    %94 = vector.load %arg11[%c16, %c0_45] : memref<32x32xf32, #tpu.memory_space<vmem>>, vector<8x32xf32>
    %cst_46 = arith.constant dense<0.000000e+00> : vector<8x32xf32>
    %95 = tpu.matmul %93, %94, %cst_46 {dimension_numbers = #tpu.dot_dimension_numbers<[1], [0], [0], [1], [0, 0, 1, 1], [], []>} : vector<8x8xf32>, vector<8x32xf32>, vector<8x32xf32> -> vector<8x32xf32>
    %96 = arith.addf %72, %95 : vector<8x32xf32>
    %97 = vector.extract_strided_slice %6 {offsets = [0, 24], sizes = [8, 8], strides = [1, 1]} : vector<8x32xf32> to vector<8x8xf32>
    %cst_47 = arith.constant 0.353553385 : f32
    %98 = vector.broadcast %cst_47 : f32 to vector<8x8xf32>
    %99 = arith.mulf %97, %98 : vector<8x8xf32>
    %100 = vector.extract_strided_slice %11 {offsets = [0, 24], sizes = [8, 8], strides = [1, 1]} : vector<8x32xf32> to vector<8x8xf32>
    %101 = vector.extract_strided_slice %16 {offsets = [0, 24], sizes = [8, 8], strides = [1, 1]} : vector<8x32xf32> to vector<8x8xf32>
    %102 = tpu.transpose %100, [1, 0] : vector<8x8xf32> -> vector<8x8xf32>
    %cst_48 = arith.constant dense<0.000000e+00> : vector<8x8xf32>
    %103 = tpu.matmul %99, %102, %cst_48 {dimension_numbers = #tpu.dot_dimension_numbers<[1], [0], [0], [1], [0, 0, 1, 1], [], []>} : vector<8x8xf32>, vector<8x8xf32>, vector<8x8xf32> -> vector<8x8xf32>
    %cst_49 = arith.constant 0xFF800000 : f32
    %104 = vector.shape_cast %20 : vector<1x8xi1> to vector<1x8xi1>
    %105 = vector.broadcast %104 : vector<1x8xi1> to vector<8x8xi1>
    %106 = vector.broadcast %cst_49 : f32 to vector<8x8xf32>
    %107 = arith.select %105, %106, %103 : vector<8x8xi1>, vector<8x8xf32>
    %cst_50 = arith.constant dense<0xFF800000> : vector<8xf32>
    %108 = vector.multi_reduction <maximumf>, %107, %cst_50 [1] : vector<8x8xf32> to vector<8xf32>
    %109 = vector.shape_cast %108 : vector<8xf32> to vector<8x1xf32>
    %110 = vector.broadcast %109 : vector<8x1xf32> to vector<8x8xf32>
    %111 = arith.subf %107, %110 : vector<8x8xf32>
    %112 = math.exp %111 : vector<8x8xf32>
    %cst_51 = arith.constant dense<0.000000e+00> : vector<8xf32>
    %113 = vector.multi_reduction <add>, %112, %cst_51 [1] : vector<8x8xf32> to vector<8xf32>
    %114 = vector.shape_cast %113 : vector<8xf32> to vector<8x1xf32>
    %115 = vector.broadcast %114 : vector<8x1xf32> to vector<8x8xf32>
    %116 = arith.divf %112, %115 : vector<8x8xf32>
    %cst_52 = arith.constant dense<0.000000e+00> : vector<8x8xf32>
    %117 = tpu.matmul %116, %101, %cst_52 {dimension_numbers = #tpu.dot_dimension_numbers<[1], [0], [0], [1], [0, 0, 1, 1], [], []>} : vector<8x8xf32>, vector<8x8xf32>, vector<8x8xf32> -> vector<8x8xf32>
    %c24 = arith.constant 24 : index
    %c0_53 = arith.constant 0 : index
    %118 = vector.load %arg11[%c24, %c0_53] : memref<32x32xf32, #tpu.memory_space<vmem>>, vector<8x32xf32>
    %cst_54 = arith.constant dense<0.000000e+00> : vector<8x32xf32>
    %119 = tpu.matmul %117, %118, %cst_54 {dimension_numbers = #tpu.dot_dimension_numbers<[1], [0], [0], [1], [0, 0, 1, 1], [], []>} : vector<8x8xf32>, vector<8x32xf32>, vector<8x32xf32> -> vector<8x32xf32>
    %120 = arith.addf %96, %119 : vector<8x32xf32>
    %121 = arith.addf %120, %1 : vector<8x32xf32>
    %c0_55 = arith.constant 0 : index
    %c0_56 = arith.constant 0 : index
    %c0_57 = arith.constant 0 : index
    %122 = vector.load %arg13[%c0_55, %c0_56, %c0_57] : memref<1x8x32xf32, #tpu.memory_space<vmem>>, vector<1x8x32xf32>
    %123 = vector.shape_cast %122 : vector<1x8x32xf32> to vector<8x32xf32>
    %124 = vector.shape_cast %121 : vector<8x32xf32> to vector<1x8x32xf32>
    tpu.vector_store %arg13[%c0_55, %c0_56, %c0_57], %124 {strides = array<i32>} : memref<1x8x32xf32, #tpu.memory_space<vmem>>, vector<1x8x32xf32>,
    return
  }
  func.func @transform_0(%arg0: i32) -> (i32, i32, i32) {
    %c0_i32 = arith.constant 0 : i32
    %c0_i32_0 = arith.constant 0 : i32
    %c0_i32_1 = arith.constant 0 : i32
    return %arg0, %c0_i32, %c0_i32_0 : i32, i32, i32
  }
  func.func @transform_1(%arg0: i32) -> (i32, i32, i32) {
    %c0_i32 = arith.constant 0 : i32
    %c0_i32_0 = arith.constant 0 : i32
    %c0_i32_1 = arith.constant 0 : i32
    return %arg0, %c0_i32, %c0_i32_0 : i32, i32, i32
  }
  func.func @transform_2(%arg0: i32) -> (i32, i32) {
    %c0_i32 = arith.constant 0 : i32
    %c0_i32_0 = arith.constant 0 : i32
    %c0_i32_1 = arith.constant 0 : i32
    return %c0_i32, %c0_i32_0 : i32, i32
  }
  func.func @transform_3(%arg0: i32) -> (i32, i32) {
    %c0_i32 = arith.constant 0 : i32
    %c0_i32_0 = arith.constant 0 : i32
    %c0_i32_1 = arith.constant 0 : i32
    return %c0_i32, %c0_i32_0 : i32, i32
  }
  func.func @transform_4(%arg0: i32) -> (i32, i32) {
    %c0_i32 = arith.constant 0 : i32
    %c0_i32_0 = arith.constant 0 : i32
    %c0_i32_1 = arith.constant 0 : i32
    return %c0_i32, %c0_i32_0 : i32, i32
  }
  func.func @transform_5(%arg0: i32) -> (i32, i32) {
    %c0_i32 = arith.constant 0 : i32
    %c0_i32_0 = arith.constant 0 : i32
    %c0_i32_1 = arith.constant 0 : i32
    return %c0_i32, %c0_i32_0 : i32, i32
  }
  func.func @transform_6(%arg0: i32) -> (i32, i32) {
    %c0_i32 = arith.constant 0 : i32
    %c0_i32_0 = arith.constant 0 : i32
    %c0_i32_1 = arith.constant 0 : i32
    return %c0_i32, %c0_i32_0 : i32, i32
  }
  func.func @transform_7(%arg0: i32) -> (i32, i32) {
    %c0_i32 = arith.constant 0 : i32
    %c0_i32_0 = arith.constant 0 : i32
    %c0_i32_1 = arith.constant 0 : i32
    return %c0_i32, %c0_i32_0 : i32, i32
  }
  func.func @transform_8(%arg0: i32) -> (i32, i32) {
    %c0_i32 = arith.constant 0 : i32
    %c0_i32_0 = arith.constant 0 : i32
    %c0_i32_1 = arith.constant 0 : i32
    return %c0_i32, %c0_i32_0 : i32, i32
  }
  func.func @transform_9(%arg0: i32) -> (i32, i32) {
    %c0_i32 = arith.constant 0 : i32
    %c0_i32_0 = arith.constant 0 : i32
    %c0_i32_1 = arith.constant 0 : i32
    return %c0_i32, %c0_i32_0 : i32, i32
  }
  func.func @transform_10(%arg0: i32) -> (i32, i32) {
    %c0_i32 = arith.constant 0 : i32
    %c0_i32_0 = arith.constant 0 : i32
    %c0_i32_1 = arith.constant 0 : i32
    return %c0_i32, %c0_i32_0 : i32, i32
  }
  func.func @transform_11(%arg0: i32) -> (i32, i32) {
    %c0_i32 = arith.constant 0 : i32
    %c0_i32_0 = arith.constant 0 : i32
    %c0_i32_1 = arith.constant 0 : i32
    return %c0_i32, %c0_i32_0 : i32, i32
  }
  func.func @transform_12(%arg0: i32) -> (i32, i32, i32) {
    %c0_i32 = arith.constant 0 : i32
    %c0_i32_0 = arith.constant 0 : i32
    %c0_i32_1 = arith.constant 0 : i32
    return %arg0, %c0_i32, %c0_i32_0 : i32, i32, i32
  }
}

</mosaic_0001>

<bundles_post_ra>
// kernel: tpu_custom_call.1
= control target key start
LH: loop header
LB: loop body
LE: loop exit
PB: predicated region body
PF: predicated region fallthrough
CT: control target
= control target key end

     0   :  { %s2976_s0 = inlined_call_operand.hbm [shape: f32[2,8,32], index: 0, kind: input, shape index: {}]   ;;  %s2977_s1 = inlined_call_operand.vmem [shape: s32[2,1,8], index: 1, kind: input, shape index: {}]   ;;  %s2978_s2 = inlined_call_operand.vmem [shape: f32[1,32], index: 2, kind: input, shape index: {}]   ;;  %s2979_s3 = inlined_call_operand.vmem [shape: f32[1,32], index: 3, kind: input, shape index: {}]   ;;  %s2980_s4 = inlined_call_operand.hbm [shape: f32[32,32], index: 4, kind: input, shape index: {}]   ;;  %s2981_s5 = inlined_call_operand.vmem [shape: f32[1,32], index: 5, kind: input, shape index: {}]   ;;  %s2982_s6 = inlined_call_operand.hbm [shape: f32[32,32], index: 6, kind: input, shape index: {}]   ;;  %s2983_s7 = inlined_call_operand.hbm [shape: f32[1,32], index: 7, kind: input, shape index: {}]   ;;  %s2984_s8 = inlined_call_operand.hbm [shape: f32[32,32], index: 8, kind: input, shape index: {}]   ;;  %s2985_s9 = inlined_call_operand.hbm [shape: f32[1,32], index: 9, kind: input, shape index: {}]   ;;  %s2986_s10 = inlined_call_operand.vmem [shape: f32[32,32], index: 10, kind: input, shape index: {}]   ;;  %s2987_s11 = inlined_call_operand.vmem [shape: f32[1,32], index: 11, kind: input, shape index: {}]   ;;  %s2988_s12 = inlined_call_operand.hbm [shape: f32[2,8,32], index: 12, kind: output, shape index: {}]  }
   0x1   :  { %2993 = sst [smem:[#allocation19_spill]] %s2980_s4 }
   0x2   :  { %2994 = sst [smem:[#allocation20_spill]] %s2987_s11 }
   0x3   :  { %2995 = sst [smem:[#allocation21_spill]] %s2988_s12 }
   0x4   :  { %17 = vsyncpa [#allocation3], 0 }
   0x5   :  { %19 = vsyncpa [#allocation3 + $0x1], 0 }
   0x6   :  { %20 = vsyncpa [#allocation6], 0 }
   0x7   :  { %21 = vsyncpa [#allocation9], 0 }
   0x8   :  { %22 = vsyncpa [#allocation12], 0 }
   0x9   :  { %23 = vsyncpa [#allocation4], 0 }
   0xa   :  { %25 = vsyncpa [#allocation4 + $0x1], 0  ;;  %s2529_s19 = smov 0   ;;  %s2531_s20 = smov 0  }
   0xb   :  { %s2533_s21 = smov 0   ;;  %s2535_s22 = smov 0  }
   0xc LB: > { %s2448_s23 = smov [#allocation5]   ;;  %s2550_s25 = sadd.s32 4294967295, %s2446_s22   ;;  %s2446_s22 = sphi %s2535_s22, %s3020_s22   ;;  %s2442_s21 = sphi %s2533_s21, %s3019_s21   ;;  %s2438_s20 = sphi %s2531_s20, %s3018_s20   ;;  %s2434_s19 = sphi %s2529_s19, %s3017_s19  }
   0xd   : > { %s342_s24 = sshll.u32 %s2448_s23, 4  ;;  %p1882_p0 = scmp.ge.s32.totalorder %s2446_s22, 1  ;;  %s2555_s24 = int_to_ptr.vmem [resolvable:$true] %s342_s24 }
   0xe   : > { %p2990_p1 = scmp.eq.s32.totalorder %s2550_s25, 0  ;;  %p324_p2 = scmp.lt.s32.totalorder %s2446_s22, 3 }
   0xf   : > { %s2449_s27 = smov [#allocation8]   ;;  %s2450_s30 = smov [#allocation7]  }
  0x10   : > { %p2557_p3 = pnand %p1882_p0, %p324_p2  ;;  %s372_s28 = sshll.u32 %s2449_s27, 4  ;;  %s2570_s28 = int_to_ptr.vmem [resolvable:$true] %s372_s28 }
  0x11   : > { %s358_s13 = sshll.u32 %s2450_s30, 4  ;;  %s2998_s4 = sld [smem:[#allocation19_spill]]  ;;  %s2572_s13 = int_to_ptr.vmem [resolvable:$true] %s358_s13 }
  0x12   : > { %s2996_s26 = scalar_select %p2557_p3, 1, 0 }
  0x13   : > { %p2100_p5 = pneg %p2557_p3 }
  0x15   : > { %p2566_p6 = pnand %p2100_p5, %p2990_p1 }
  0x17   : > { %s2198_s3 = scalar_lea.hbm %s2998_s4, 512  ;;  %p2582_p8 = pneg %p2566_p6 }
  0x18   : > { %p2199_p7 = scmp.ne.s32.totalorder %s2998_s4, %s2198_s3  ;;  %p2205_p11 = scmp.lt.u32.totalorder %s2198_s3, %s2998_s4 }
  0x1a   : > { %p2201_p9 = pnand %p2582_p8, %p2199_p7 }
  0x1c   : > { %p2202_p10 = pneg %p2201_p9 }
  0x1e   : > { %p2207_p12 = pnand %p2205_p11, %p2202_p10 }
  0x20   : > { %2210 = shalt.err (!%p2207_p12)
}
  0x21   : > { %s2211_s27 = scalar_lea.vmem %s2555_s24, 512  ;;  %p2219_p5 = scmp.lt.s32.totalorder %s2555_s24, %s2555_s24 }
  0x22   : > { %p2212_p13 = scmp.ne.s32.totalorder %s2555_s24, %s2211_s27  ;;  %p2220_p4 = scmp.lt.s32.totalorder %s2211_s27, %s2211_s27 }
  0x24   : > { %p2214_p0 = pnand %p2212_p13, %p2582_p8  ;;  %p2221_p7 = por %p2220_p4, %p2219_p5 }
  0x26   : > { %p2215_p2 = pneg %p2214_p0 }
  0x28   : > { %p2222_p9 = pnand %p2221_p7, %p2215_p2 }
  0x2a   : > { %2225 = shalt.err (!%p2222_p9)
}
  0x2b   : > { %s2451_s30 = smov 128   ;;  %s2452_s2 = smov 8  }
  0x2c   : > { %2103 = dma.hbm_to_vmem [thread:$0]  (!%p2566_p6), %s2998_s4, 512, %s2555_s24, [#allocation6], %s2451_s30, %s2451_s30, %s2452_s2  }
  0x2d   : > { %s2226_s18 = scalar_lea.hbm %s2983_s7, 16 }
  0x2e   : > { %p2227_p4 = scmp.ne.s32.totalorder %s2983_s7, %s2226_s18  ;;  %p2233_p12 = scmp.lt.u32.totalorder %s2226_s18, %s2983_s7 }
  0x30   : > { %p2229_p10 = pnand %p2227_p4, %p2582_p8 }
  0x32   : > { %p2230_p11 = pneg %p2229_p10 }
  0x34   : > { %p2235_p13 = pnand %p2233_p12, %p2230_p11 }
  0x36   : > { %2238 = shalt.err (!%p2235_p13)
}
  0x37   : > { %s2239_s24 = scalar_lea.vmem %s2570_s28, 16  ;;  %s2246_s14 = scalar_lea.vmem %s2570_s28, 32 }
  0x38   : > { %p2240_p0 = scmp.ne.s32.totalorder %s2570_s28, %s2239_s24  ;;  %p2247_p7 = scmp.lt.s32.totalorder %s2570_s28, %s2570_s28 }
  0x39   : > { %p2248_p9 = scmp.lt.s32.totalorder %s2246_s14, %s2239_s24 }
  0x3a   : > { %p2242_p2 = pnand %p2240_p0, %p2582_p8 }
  0x3b   : > { %p2249_p4 = por %p2248_p9, %p2247_p7 }
  0x3c   : > { %p2243_p5 = pneg %p2242_p2 }
  0x3e   : > { %p2250_p10 = pnand %p2249_p4, %p2243_p5 }
  0x40   : > { %2253 = shalt.err (!%p2250_p10)
}
  0x41   : > { %2109 = dma.hbm_to_vmem [thread:$0]  (!%p2566_p6), %s2983_s7, 16, %s2570_s28, [#allocation9]  }
  0x42   : > { %s2254_s16 = scalar_lea.hbm %s2982_s6, 512 }
  0x43   : > { %p2255_p11 = scmp.ne.s32.totalorder %s2982_s6, %s2254_s16  ;;  %p2261_p0 = scmp.lt.u32.totalorder %s2254_s16, %s2982_s6 }
  0x45   : > { %p2257_p12 = pnand %p2255_p11, %p2582_p8 }
  0x47   : > { %p2258_p13 = pneg %p2257_p12 }
  0x49   : > { %p2263_p2 = pnand %p2261_p0, %p2258_p13 }
  0x4b   : > { %2266 = shalt.err (!%p2263_p2)
}
  0x4c   : > { %s2267_s28 = scalar_lea.vmem %s2572_s13, 512  ;;  %p2275_p4 = scmp.lt.s32.totalorder %s2572_s13, %s2572_s13 }
  0x4d   : > { %p2268_p5 = scmp.ne.s32.totalorder %s2572_s13, %s2267_s28  ;;  %p2276_p10 = scmp.lt.s32.totalorder %s2267_s28, %s2267_s28 }
  0x4f   : > { %p2270_p7 = pnand %p2268_p5, %p2582_p8  ;;  %p2277_p11 = por %p2276_p10, %p2275_p4 }
  0x51   : > { %p2271_p9 = pneg %p2270_p7 }
  0x53   : > { %p2278_p12 = pnand %p2277_p11, %p2271_p9 }
  0x55   : > { %2281 = shalt.err (!%p2278_p12)
}
  0x56   : > { %2106 = dma.hbm_to_vmem [thread:$0]  (!%p2566_p6), %s2982_s6, 512, %s2572_s13, [#allocation6], %s2451_s30, %s2451_s30, %s2452_s2  }
  0x57   : > { %s2453_s12 = smov [#allocation10]   ;;  %s2454_s15 = smov [#allocation11]  }
  0x58   : > { %s382_s3 = sshll.u32 %s2453_s12, 4  ;;  %s396_s16 = sshll.u32 %s2454_s15, 4  ;;  %s383_s3 = int_to_ptr.vmem [resolvable:$true] %s382_s3  ;;  %s397_s16 = int_to_ptr.vmem [resolvable:$true] %s396_s16 }
  0x59   : > { %s2282_s27 = scalar_lea.hbm %s2984_s8, 512 }
  0x5a   : > { %p2283_p13 = scmp.ne.s32.totalorder %s2984_s8, %s2282_s27  ;;  %p2289_p5 = scmp.lt.u32.totalorder %s2282_s27, %s2984_s8 }
  0x5c   : > { %p2285_p0 = pnand %p2283_p13, %p2582_p8 }
  0x5e   : > { %p2286_p2 = pneg %p2285_p0 }
  0x60   : > { %p2291_p7 = pnand %p2289_p5, %p2286_p2 }
  0x62   : > { %2294 = shalt.err (!%p2291_p7)
}
  0x63   : > { %s2295_s13 = scalar_lea.vmem %s383_s3, 512  ;;  %p2303_p11 = scmp.lt.s32.totalorder %s383_s3, %s383_s3 }
  0x64   : > { %p2296_p9 = scmp.ne.s32.totalorder %s383_s3, %s2295_s13  ;;  %p2304_p12 = scmp.lt.s32.totalorder %s2295_s13, %s2295_s13 }
  0x66   : > { %p2298_p4 = pnand %p2296_p9, %p2582_p8  ;;  %p2305_p1 = por %p2304_p12, %p2303_p11 }
  0x68   : > { %p2299_p10 = pneg %p2298_p4 }
  0x6a   : > { %p2306_p3 = pnand %p2305_p1, %p2299_p10 }
  0x6c   : > { %2309 = shalt.err (!%p2306_p3)
}
  0x6d   : > { %2112 = dma.hbm_to_vmem [thread:$0]  (!%p2566_p6), %s2984_s8, 512, %s383_s3, [#allocation9], %s2451_s30, %s2451_s30, %s2452_s2  }
  0x6e   : > { %s2310_s18 = scalar_lea.hbm %s2985_s9, 16 }
  0x6f   : > { %p2311_p1 = scmp.ne.s32.totalorder %s2985_s9, %s2310_s18  ;;  %p2317_p0 = scmp.lt.u32.totalorder %s2310_s18, %s2985_s9 }
  0x71   : > { %p2313_p3 = pnand %p2311_p1, %p2582_p8 }
  0x73   : > { %p2314_p13 = pneg %p2313_p3 }
  0x75   : > { %p2319_p2 = pnand %p2317_p0, %p2314_p13 }
  0x77   : > { %2322 = shalt.err (!%p2319_p2)
}
  0x78   : > { %s2323_s14 = scalar_lea.vmem %s397_s16, 16  ;;  %s2330_s30 = scalar_lea.vmem %s397_s16, 32 }
  0x79   : > { %p2324_p5 = scmp.ne.s32.totalorder %s397_s16, %s2323_s14  ;;  %p2331_p4 = scmp.lt.s32.totalorder %s397_s16, %s397_s16 }
  0x7a   : > { %p2332_p10 = scmp.lt.s32.totalorder %s2330_s30, %s2323_s14 }
  0x7b   : > { %p2326_p7 = pnand %p2324_p5, %p2582_p8 }
  0x7c   : > { %p2333_p11 = por %p2332_p10, %p2331_p4 }
  0x7d   : > { %p2327_p9 = pneg %p2326_p7 }
  0x7f   : > { %p2334_p12 = pnand %p2333_p11, %p2327_p9 }
  0x81   : > { %2337 = shalt.err (!%p2334_p12)
}
  0x82   : > { %2115 = dma.hbm_to_vmem [thread:$0]  (!%p2566_p6), %s2985_s9, 16, %s397_s16, [#allocation12]  }
  0x83   : > { %s1881_s17 = sadd.s32 4294967294, %s2446_s22   ;;  %s2697_s29 = sadd.s32 1, %s2446_s22  }
  0x84   : > { %s38_s13 = sadd.s32 1, %s2442_s21  ;;  %s35_s4 = ssub.s32 %s2446_s22, %s2697_s29 }
  0x85   : > { %p45_p8 = scmp.ne.s32.totalorder %s2442_s21, %s2438_s20  ;;  %p36_p1 = scmp.eq.s32.totalorder %s35_s4, 0 }
  0x86   : > { %p46_p3 = scmp.eq.s32.totalorder %s2446_s22, 0  ;;  %p51_p13 = scmp.ne.s32.totalorder %s2438_s20, %s2434_s19 }
  0x87   : > { %p311_p0 = scmp.eq.s32.totalorder %s2550_s25, 1  ;;  %p3000_p5 = scmp.eq.s32.totalorder %s2550_s25, 0 }
  0x88   : > { %s2709_s11 = scalar_select %p36_p1, %s2442_s21, %s38_s13  }
  0x89   : > { %p47_p2 = por %p46_p3, %p45_p8  ;;  %p2713_p7 = por %p3000_p5, %p51_p13 }
  0x8a   : > { %p2717_p6 = por %p311_p0, %p45_p8  ;;  %p317_p9 = scmp.eq.s32.totalorder %s1881_s17, 1 }
  0x8b   : > { %p2129_p4 = scmp.lt.s32.totalorder %s2446_s22, 2  ;;  %s413_s15 = sand.u32 1, %s2442_s21  }
  0x8c   : > { %s3002_s16 = scalar_select %p2717_p6, 1, 0 }
  0x8d   : > { %p2723_p10 = por %p317_p9, %p51_p13  ;;  %s1889_s23 = sshll.u32 %s413_s15, 3 }
  0x8e   : > { %s1890_s27 = sshll.u32 %s2446_s22, 7  ;;  %s417_s30 = scalar_lea.vmem [#allocation2], %s1889_s23 }
  0x8f   : > { %s3003_s18 = scalar_select %p2723_p10, 1, 0 }
  0x90   : > { %s2731_s14 = scalar_lea.hbm %s2976_s0, %s1890_s27  ;;  %s424_s2 = sshll.u32 %s417_s30, 4  ;;  %s2737_s2 = int_to_ptr.vmem [resolvable:$true] %s424_s2 }
  0x91   : > { %p2733_p11 = pnand %p2129_p4, %p47_p2  ;;  %s414_s17 = scalar_lea.sflag [#allocation3], %s413_s15 }
  0x92   : > { %s2338_s13 = scalar_lea.hbm %s2731_s14, 128  ;;  %s2343_s27 = scalar_lea.hbm %s2976_s0, 256 }
  0x93   : > { %p2339_p12 = scmp.ne.s32.totalorder %s2731_s14, %s2338_s13  ;;  %p2340_p8 = pneg %p2733_p11 }
  0x94   : > { %p2344_p13 = scmp.lt.u32.totalorder %s2731_s14, %s2976_s0  ;;  %p2345_p0 = scmp.lt.u32.totalorder %s2343_s27, %s2338_s13 }
  0x95   : > { %p2341_p1 = pnand %p2340_p8, %p2339_p12  ;;  %p2347_p5 = scmp.lt.u32.totalorder %s2338_s13, %s2731_s14 }
  0x96   : > { %p2346_p2 = por %p2345_p0, %p2344_p13 }
  0x97   : > { %p2342_p3 = pneg %p2341_p1 }
  0x98   : > { %p2348_p9 = por %p2347_p5, %p2346_p2 }
  0x9a   : > { %p2349_p4 = pnand %p2348_p9, %p2342_p3 }
  0x9c   : > { %2352 = shalt.err (!%p2349_p4)
}
  0x9d   : > { %s2353_s15 = scalar_lea.vmem %s2737_s2, 128  ;;  %s2455_s30 = smov [#allocation2]  }
  0x9e   : > { %p2354_p12 = scmp.ne.s32.totalorder %s2737_s2, %s2353_s15  ;;  %s2358_s4 = sshll.u32 %s2455_s30, 4  ;;  %s2359_s4 = int_to_ptr.vmem [resolvable:$false] %s2358_s4 }
  0x9f   : > { %s2360_s23 = scalar_lea.vmem %s2359_s4, 256  ;;  %p2361_p6 = scmp.lt.s32.totalorder %s2737_s2, %s2359_s4 }
  0xa0   : > { %p2356_p1 = pnand %p2354_p12, %p2340_p8  ;;  %p2362_p13 = scmp.lt.s32.totalorder %s2360_s23, %s2353_s15 }
  0xa2   : > { %p2357_p10 = pneg %p2356_p1  ;;  %p2363_p0 = por %p2362_p13, %p2361_p6 }
  0xa4   : > { %p2364_p2 = pnand %p2363_p0, %p2357_p10 }
  0xa6   : > { %2367 = shalt.err (!%p2364_p2)
}
  0xa7   : > { %2119 = dma.hbm_to_vmem [thread:$0]  (!%p2733_p11), %s2731_s14, 128, %s2737_s2, %s414_s17  }
  0xa8   : > { %p3005_p3 = scmp.ne.s32.totalorder %s2996_s26, 0 }
  0xa9   : > { %s2767_s13 = sand.u32 (!%p3005_p3), 1, %s2438_s20  }
  0xaa   : > { %439 = sbr.rel (%p3005_p3) target bundleno = 2976 (0xba0), region = 68  ;;  %s1892_s27 = sshll.u32 (!%p3005_p3), %s2767_s13, 3 }
  0xab   : > { %s442_s24 = scalar_lea.sflag (!%p3005_p3), [#allocation3], %s2767_s13  ;;  %s2773_s28 = scalar_lea.vmem (!%p3005_p3), [#allocation2], %s1892_s27 }
  0xb1   : > { %2413 = dma.done.wait (%p2713_p7), %s442_s24, 128  }
  0xb2   : > { %2415 = vsyncadd (%p2713_p7), %s442_s24, 4294967168  ;;  %p3006_p6 = scmp.eq.s32.totalorder %s2550_s25, 0 }
  0xb4   : > { %2417 = dma.done.wait (%p3006_p6), [#allocation6], 1024   ;;  %p3007_p10 = pmov %p3006_p6 }
  0xb5   : > { %p3008_p11 = pmov %p3006_p6 }
  0xb6   : > { %2419 = vsyncadd (%p3007_p10), [#allocation6], 4294966272 }
  0xb7   : > { %2421 = dma.done.wait (%p3008_p11), [#allocation9], 528   ;;  %p3009_p8 = pmov %p3006_p6 }
  0xb8   : > { %p3010_p5 = pmov %p3006_p6 }
  0xb9   : > { %2423 = vsyncadd (%p3009_p8), [#allocation9], 4294966768 }
  0xba   : > { %2425 = dma.done.wait (%p3010_p5), [#allocation12], 16   ;;  %p3011_p9 = pmov %p3010_p5 }
  0xbb   : > { %v2456_v0 = vmov 0.0|0.0   ;;  %vm2457_vm0 = vmmov 0   ;;  %v2458_v1 = vmov 0.0   ;;  %v598_v2 = vld [vmem:[#allocation7] sm:$0xff]  ;;  %v599_v3 = vld [vmem:[#allocation7 + $0x8] sm:$0xff]  ;;  %v600_v7 = vld [vmem:[#allocation7 + $0x10] sm:$0xff]  ;;  %v849_v30 = vlaneseq }
  0xbc   : > { %2427 = vsyncadd (%p3011_p9), [#allocation12], 4294967280  ;;  %2064 = vmatprep.subr.bf16.mxu1 %v2456_v0  ;;  %2058 = vmatprep.subr.bf16.mxu0 %v2456_v0  ;;  %v513_v4 = vld [vmem:[#allocation5] sm:$0xff]  ;;  %v2065_v5 = vpack.c.bf16 %v599_v3, %v598_v2  ;;  %v514_v6 = vld [vmem:[#allocation5 + $0x8] sm:$0xff]  ;;  %vm524_vm1 = vcmask 261120   ;;  %vm771_vm2 = vcmask 64512  }
  0xbd   : > { %1984 = vmatprep.mubr.msk.f32.mxu1 %vm2457_vm0, %v2458_v1  ;;  %1973 = vmatprep.mubr.msk.f32.mxu0 %vm2457_vm0, %v2458_v1  ;;  %v601_v8 = vld [vmem:[#allocation7 + $0x18] sm:$0xff]  ;;  %v2059_v9 = vpack.c.bf16 %v514_v6, %v513_v4  ;;  %v515_v10 = vld [vmem:[#allocation5 + $0x10] sm:$0xff]  ;;  %v1901_v15 = vld [vmem:[#allocation8] ss:$0 sm:$0xff]  ;;  %s2459_s14 = smov 120   ;;  %p509_p7 = scmp.lt.s32.totalorder %s2550_s25, 1 }
  0xbe   : > { %v516_v11 = vld [vmem:[#allocation5 + $0x18] sm:$0xff]  ;;  %2066 = vmatpush3.bf16.msra.mxu1 %v2065_v5  ;;  %v2068_v12 = vpack.c.bf16 %v601_v8, %v600_v7  ;;  %v1899_v16 = vld [vmem:[%s2981_s5] ss:$0 sm:$0xff]  ;;  %v679_v24 = vld [vmem:[#allocation10] sm:$0xff]  ;;  %v850_v32 = vshrl.u32 %v849_v30, 7  ;;  %v2460_v34 = vmov 0  }
  0xbf   : > { %2060 = vmatpush3.bf16.msra.mxu0 %v2059_v9  ;;  %2067 = vmatprep.subr.bf16.mxu1 %v2456_v0  ;;  %v2062_v13 = vpack.c.bf16 %v516_v11, %v515_v10  ;;  %v2796_v14 = vld [vmem:[%s2773_s28] sm:$0xff]  ;;  %s510_s2 = scalar_select %p509_p7, %s2550_s25, 1  ;;  %v1903_v46 = vld [vmem:[#allocation11] ss:$0 sm:$0xff] }
  0xc0   : > { %2061 = vmatprep.subr.bf16.mxu0 %v2456_v0  ;;  %v680_v25 = vld [vmem:[#allocation10 + $0x8] sm:$0xff]  ;;  %v681_v26 = vld [vmem:[#allocation10 + $0x10] sm:$0xff]  ;;  %v682_v28 = vld [vmem:[#allocation10 + $0x18] sm:$0xff]  ;;  %v851_v33 = vsub.s32 0, %v850_v32  ;;  %s2461_s23 = smov 112   ;;  %s2462_s24 = smov 104  }
  0xc1   : > { %v2071_v27 = vpack.c.bf16 %v680_v25, %v679_v24  ;;  %v2074_v29 = vpack.c.bf16 %v682_v28, %v681_v26  ;;  %s511_s15 = scalar_lea.vmem %s2977_s1, %s510_s2  ;;  %v939_v55 = vld [vmem:[%s2986_s10] sm:$0xff]  ;;  %v1181_v5 = vld [vmem:[%s2986_s10 + $0x8] sm:$0xff]  ;;  %s3012_s2 = sld [smem:[#allocation20_spill]] }
  0xc2   : > { %2069 = vmatpush3.bf16.msra.mxu1 %v2068_v12  ;;  %v760_v31 = vld [vmem:[%s511_s15] sm:$0x1]  ;;  %s1923_s4 = sshll.u32 %s2550_s25, 7  ;;  %s3013_s12 = sld [smem:[#allocation21_spill]] }
  0xc3   : > { %2063 = vmatpush3.bf16.msra.mxu0 %v2062_v13  ;;  %1998 = vmatprep.subr.mxu1 %v2458_v1  ;;  %vm761_vm3 = vcmp.ne.s32.totalorder %v760_v31, 0  ;;  %s1741_s25 = scalar_lea.sflag [#allocation4], %s2767_s13  ;;  %p3014_p12 = scmp.ne.s32.totalorder %s3002_s16, 0 }
  0xc4   : > { %2070 = vmatprep.subr.bf16.mxu0 %v2456_v0  ;;  %v848_v35 = vsel %vm761_vm3, 1, %v2460_v34 }
  0xc5   : > { %1985 = vmatmul.mubr.msk.f32.vlgmr.msra.gmra.mrb[0].mxu1 %vm524_vm1, %v2796_v14  ;;  %v2835_v36 = vrot.slane %v848_v35, %v851_v33 }
  0xc6   : > { %1974 = vmatmul.mubr.msk.f32.vlgmr.msra.gmra.mrb[0].mxu0 %vm524_vm1, %v2796_v14  ;;  %2000 = vmatprep.mubr.msk.f32.mxu1 %vm2457_vm0, %v2458_v1 }
  0xc7   : > { %1995 = vmatprep.mubr.msk.f32.mxu0 %vm2457_vm0, %v2458_v1  ;;  %2072 = vmatpush3.bf16.msra.mxu0 %v2071_v27  ;;  %vm853_vm4 = vcmp.eq.s32.totalorder %v2835_v36, 1  ;;  %v1905_v27 = vld [vmem:[%s3012_s2] ss:$0 sm:$0xff]  ;;  %v1663_v36 = vld [vmem:[%s2986_s10 + $0x18] sm:$0xff] }
  0xc8   : > { %2073 = vmatprep.subr.bf16.mxu0 %v2456_v0 }
  0xcb   : > { %2075 = vmatpush3.bf16.msra.mxu0 %v2074_v29 }
  0xcc   : > { %2008 = vmatprep.subr.mxu0 %v2458_v1 }
  0xce   : > { %1996 = vmatmul.mubr.msk.f32.vlgmr.msra.gmra.mrb[2].mxu0 %vm524_vm1, %v2796_v14 }
  0xcf   : > { %2010 = vmatprep.mubr.msk.f32.mxu0 %vm2457_vm0, %v2458_v1  ;;  %2009 = vmatpush3.msra.mxu0 %v939_v55 }
  0xd0   : > { %2018 = vmatprep.subr.mxu0 %v2458_v1 }
 0x198   : > { %v675_v17 = vpop.f32.mrb[0].mxu1 }
 0x199   : > { %v2810_v18 = vadd.f32 %v1901_v15, %v675_v17  ;;  %v594_v19 = vpop.f32.mrb[0].mxu0  ;;  %v1986_v20 = vpop.f32.mrb[1].mxu1 }
 0x19a   : > { %v595_v21 = vadd.f32 %v1899_v16, %v594_v19  ;;  %v1975_v22 = vpop.f32.mrb[1].mxu0 }
 0x19b   : > { %1016 = vrot.lane.b32.xlu1 %v2810_v18, %s2459_s14  ;;  %1999 = vmatpush3.xpose.msk.msra.mxu1 %vm771_vm2, %v2810_v18 }
 0x19c   : > { %v2816_v23 = vmul.f32 0.35355338, %v595_v21  ;;  %2003 = vmatprep.subr.mxu1 %v2458_v1 }
 0x19e   : > { %2001 = vmatmul.mubr.msk.f32.vlgmr.msra.gmra.mrb[2].mxu1 %vm771_vm2, %v2816_v23 }
 0x19f   : > { %1014 = vrot.lane.b32.xlu1 %v2816_v23, %s2459_s14  ;;  %2005 = vmatprep.mubr.msk.f32.mxu1 %vm2457_vm0, %v2458_v1 }
 0x1a1   : > { %v756_v47 = vpop.f32.mrb[2].mxu0 }
 0x1a2   : > { %v2842_v48 = vadd.f32 %v1903_v46, %v756_v47  ;;  %v1997_v49 = vpop.f32.mrb[3].mxu0 }
 0x1a4   : > { %2004 = vmatpush3.msra.mxu1 %v2842_v48 }
 0x1a5   : > { %2013 = vmatprep.subr.mxu1 %v2458_v1 }
 0x20d   : > { %v1017_v52 = vpop.permute.xlu1 %1016 }
 0x211   : > { %v1015_v54 = vpop.permute.xlu1 %1014 }
 0x271   : > { %v844_v37 = vpop.f32.mrb[2].mxu1 }
 0x272   : > { %v854_v38 = vsel %vm853_vm4, -inf, %v844_v37  ;;  %v2002_v39 = vpop.f32.mrb[3].mxu1  ;;  %v1422_v37 = vld [vmem:[%s2986_s10 + $0x10] sm:$0xff] }
 0x273   : > { %v855_v40 = vsel %vm771_vm2, %v854_v38, -inf }
 0x274   : > { %856 = vmax.xlane.f32.xlu0 %v855_v40 }
 0x301   : > { %v857_v41 = vpop.xlane.xlu0 %856 }
 0x302   : > { %v858_v42 = vsub.f32 %v854_v38, %v857_v41 }
 0x304   : > { %v859_v43 = vmul.f32 1.442695, %v858_v42 }
 0x306   : > { %2182 = vpow2.f32 %v859_v43 }
 0x310   : > { %v2183_v44 = vpop.eup %2182 }
 0x311   : > { %v861_v45 = vsel %vm771_vm2, %v2183_v44, 0.0 }
 0x312   : > { %862 = vadd.xlane.f32.xlu0 %v861_v45 }
 0x39f   : > { %v863_v50 = vpop.xlane.xlu0 %862 }
 0x3a0   : > { %2184 = vrcp.f32 %v863_v50 }
 0x3aa   : > { %v2185_v51 = vpop.eup %2184 }
 0x3ab   : > { %v865_v53 = vmul.f32 %v2185_v51, %v2183_v44 }
 0x3ad   : > { %2006 = vmatmul.mubr.msk.f32.vlgmr.msra.gmra.mrb[4].mxu1 %vm771_vm2, %v865_v53 }
 0x3ae   : > { %2014 = vmatpush3.xpose.msk.msra.mxu1 %vm771_vm2, %v1017_v52  ;;  %2015 = vmatprep.mubr.msk.f32.mxu1 %vm2457_vm0, %v2458_v1 }
 0x3af   : > { %2023 = vmatprep.subr.mxu1 %v2458_v1 }
 0x3b1   : > { %2016 = vmatmul.mubr.msk.f32.vlgmr.msra.gmra.mrb[6].mxu1 %vm771_vm2, %v1015_v54 }
 0x3b2   : > { %2025 = vmatprep.mubr.msk.f32.mxu1 %vm2457_vm0, %v2458_v1  ;;  %2024 = vmatpush3.msra.mxu1 %v1181_v5 }
 0x3b3   : > { %2033 = vmatprep.subr.mxu1 %v2458_v1 }
 0x480   : > { %v935_v56 = vpop.f32.mrb[4].mxu1 }
 0x481   : > { %v2007_v57 = vpop.f32.mrb[5].mxu1  ;;  %2011 = vmatmul.mubr.msk.f32.vlgmr.msra.gmra.mrb[4].mxu0 %vm771_vm2, %v935_v56 }
 0x482   : > { %2020 = vmatprep.mubr.msk.f32.mxu0 %vm2457_vm0, %v2458_v1 }
 0x484   : > { %v1088_v58 = vpop.f32.mrb[6].mxu1 }
 0x485   : > { %v1092_v59 = vsel %vm853_vm4, -inf, %v1088_v58  ;;  %v2017_v60 = vpop.f32.mrb[7].mxu1 }
 0x486   : > { %v1093_v61 = vsel %vm771_vm2, %v1092_v59, -inf }
 0x487   : > { %1094 = vmax.xlane.f32.xlu0 %v1093_v61 }
 0x49d   : > { %1105 = vrot.lane.b32.xlu0 %v2842_v48, %s2459_s14  ;;  %s2931_s14 = scalar_lea.hbm %s3013_s12, %s1923_s4 }
 0x4a1   : > { %1258 = vrot.lane.b32.xlu0 %v2810_v18, %s2461_s23 }
 0x4a5   : > { %1256 = vrot.lane.b32.xlu0 %v2816_v23, %s2461_s23 }
 0x514   : > { %v1095_v62 = vpop.xlane.xlu0 %1094 }
 0x515   : > { %v1096_v63 = vsub.f32 %v1092_v59, %v1095_v62 }
 0x517   : > { %v1097_v0 = vmul.f32 1.442695, %v1096_v63 }
 0x518   : > { %v1106_v2 = vpop.permute.xlu0 %1105 }
 0x519   : > { %2186 = vpow2.f32 %v1097_v0  ;;  %2019 = vmatpush3.msra.mxu0 %v1106_v2 }
 0x51a   : > { %2028 = vmatprep.subr.mxu0 %v2458_v1 }
 0x51c   : > { %v1259_v10 = vpop.permute.xlu0 %1258 }
 0x520   : > { %v1257_v12 = vpop.permute.xlu0 %1256 }
 0x523   : > { %v2187_v3 = vpop.eup %2186 }
 0x524   : > { %v1099_v4 = vsel %vm771_vm2, %v2187_v3, 0.0 }
 0x525   : > { %1100 = vadd.xlane.f32.xlu1 %v1099_v4 }
 0x536   : > { %1346 = vrot.lane.b32.xlu1 %v2842_v48, %s2461_s23  ;;  %s508_s23 = scalar_lea.vmem [#allocation13], %s1892_s27  ;;  %s2463_s27 = smov [#allocation13]  }
 0x537   : > { %s2372_s3 = sshll.u32 %s2463_s27, 4  ;;  %s2373_s3 = int_to_ptr.vmem [resolvable:$false] %s2372_s3 }
 0x538   : > { %s2374_s17 = scalar_lea.vmem %s2373_s3, 256 }
 0x53a   : > { %1499 = vrot.lane.b32.xlu1 %v2810_v18, %s2462_s24 }
 0x554   : > { %v1009_v6 = vpop.f32.mrb[4].mxu0 }
 0x555   : > { %v2012_v7 = vpop.f32.mrb[5].mxu0  ;;  %v1013_v28 = vadd.f32 %v1905_v27, %v1009_v6 }
 0x5b2   : > { %v1101_v8 = vpop.xlane.xlu1 %1100 }
 0x5b3   : > { %2188 = vrcp.f32 %v1101_v8 }
 0x5b6   : > { %v1347_v15 = vpop.permute.xlu1 %1346 }
 0x5ba   : > { %v1500_v32 = vpop.permute.xlu1 %1499 }
 0x5bd   : > { %v2189_v9 = vpop.eup %2188 }
 0x5be   : > { %v1103_v11 = vmul.f32 %v2189_v9, %v2187_v3 }
 0x5c0   : > { %2021 = vmatmul.mubr.msk.f32.vlgmr.msra.gmra.mrb[6].mxu0 %vm771_vm2, %v1103_v11 }
 0x5c1   : > { %2029 = vmatpush3.xpose.msk.msra.mxu0 %vm771_vm2, %v1259_v10  ;;  %2030 = vmatprep.mubr.msk.f32.mxu0 %vm2457_vm0, %v2458_v1 }
 0x5c2   : > { %2038 = vmatprep.subr.mxu0 %v2458_v1 }
 0x5c4   : > { %2031 = vmatmul.mubr.msk.f32.vlgmr.msra.gmra.mrb[8].mxu0 %vm771_vm2, %v1257_v12 }
 0x5c5   : > { %2040 = vmatprep.mubr.msk.f32.mxu0 %vm2457_vm0, %v2458_v1  ;;  %2039 = vmatpush3.msra.mxu0 %v1422_v37 }
 0x5c6   : > { %2048 = vmatprep.subr.mxu0 %v2458_v1 }
 0x693   : > { %v1177_v13 = vpop.f32.mrb[6].mxu0 }
 0x694   : > { %v2022_v16 = vpop.f32.mrb[7].mxu0  ;;  %2026 = vmatmul.mubr.msk.f32.vlgmr.msra.gmra.mrb[8].mxu1 %vm771_vm2, %v1177_v13 }
 0x695   : > { %2034 = vmatpush3.msra.mxu1 %v1347_v15  ;;  %2035 = vmatprep.mubr.msk.f32.mxu1 %vm2457_vm0, %v2458_v1 }
 0x696   : > { %2043 = vmatprep.subr.mxu1 %v2458_v1 }
 0x697   : > { %v1330_v17 = vpop.f32.mrb[8].mxu0 }
 0x698   : > { %v1334_v18 = vsel %vm853_vm4, -inf, %v1330_v17  ;;  %v2032_v19 = vpop.f32.mrb[9].mxu0 }
 0x699   : > { %v1335_v20 = vsel %vm771_vm2, %v1334_v18, -inf }
 0x69a   : > { %1336 = vmax.xlane.f32.xlu0 %v1335_v20 }
 0x727   : > { %v1337_v21 = vpop.xlane.xlu0 %1336 }
 0x728   : > { %v1338_v22 = vsub.f32 %v1334_v18, %v1337_v21 }
 0x72a   : > { %v1339_v24 = vmul.f32 1.442695, %v1338_v22 }
 0x72c   : > { %2190 = vpow2.f32 %v1339_v24 }
 0x736   : > { %v2191_v25 = vpop.eup %2190 }
 0x737   : > { %v1341_v26 = vsel %vm771_vm2, %v2191_v25, 0.0 }
 0x738   : > { %1342 = vadd.xlane.f32.xlu1 %v1341_v26 }
 0x749   : > { %1497 = vrot.lane.b32.xlu1 %v2816_v23, %s2462_s24 }
 0x767   : > { %v1251_v29 = vpop.f32.mrb[8].mxu1 }
 0x768   : > { %v1255_v30 = vadd.f32 %v1251_v29, %v1013_v28  ;;  %v2027_v31 = vpop.f32.mrb[9].mxu1 }
 0x7c5   : > { %v1343_v33 = vpop.xlane.xlu1 %1342 }
 0x7c6   : > { %2192 = vrcp.f32 %v1343_v33 }
 0x7c9   : > { %v1498_v23 = vpop.permute.xlu1 %1497 }
 0x7d0   : > { %v2193_v34 = vpop.eup %2192 }
 0x7d1   : > { %v1345_v35 = vmul.f32 %v2193_v34, %v2191_v25 }
 0x7d3   : > { %2036 = vmatmul.mubr.msk.f32.vlgmr.msra.gmra.mrb[10].mxu1 %vm771_vm2, %v1345_v35 }
 0x7d4   : > { %2044 = vmatpush3.xpose.msk.msra.mxu1 %vm771_vm2, %v1500_v32  ;;  %2045 = vmatprep.mubr.msk.f32.mxu1 %vm2457_vm0, %v2458_v1 }
 0x7d5   : > { %2053 = vmatprep.subr.mxu1 %v2458_v1 }
 0x7d7   : > { %2046 = vmatmul.mubr.msk.f32.vlgmr.msra.gmra.mrb[12].mxu1 %vm771_vm2, %v1498_v23 }
 0x7d8   : > { %2055 = vmatprep.mubr.msk.f32.mxu1 %vm2457_vm0, %v2458_v1  ;;  %2054 = vmatpush3.msra.mxu1 %v1663_v36 }
 0x8a6   : > { %v1418_v38 = vpop.f32.mrb[10].mxu1 }
 0x8a7   : > { %v2037_v39 = vpop.f32.mrb[11].mxu1  ;;  %2041 = vmatmul.mubr.msk.f32.vlgmr.msra.gmra.mrb[10].mxu0 %vm771_vm2, %v1418_v38 }
 0x8a8   : > { %2050 = vmatprep.mubr.msk.f32.mxu0 %vm2457_vm0, %v2458_v1 }
 0x8aa   : > { %v1571_v40 = vpop.f32.mrb[12].mxu1 }
 0x8ab   : > { %v1575_v41 = vsel %vm853_vm4, -inf, %v1571_v40  ;;  %v2047_v42 = vpop.f32.mrb[13].mxu1 }
 0x8ac   : > { %v1576_v43 = vsel %vm771_vm2, %v1575_v41, -inf }
 0x8ad   : > { %1577 = vmax.xlane.f32.xlu0 %v1576_v43 }
 0x8c3   : > { %1587 = vrot.lane.b32.xlu0 %v2842_v48, %s2462_s24  ;;  %s1754_s24 = sshll.u32 %s508_s23, 4  ;;  %s2933_s24 = int_to_ptr.vmem [resolvable:$true] %s1754_s24 }
 0x8c4   : > { %s2368_s2 = scalar_lea.vmem %s2933_s24, 128  ;;  %p2375_p0 = scmp.lt.s32.totalorder %s2933_s24, %s2373_s3 }
 0x8c5   : > { %p2369_p4 = scmp.ne.s32.totalorder %s2933_s24, %s2368_s2  ;;  %p2376_p2 = scmp.lt.s32.totalorder %s2374_s17, %s2368_s2 }
 0x8c7   : > { %p2370_p1 = pnand %p2369_p4, %p3014_p12  ;;  %p2377_p3 = por %p2376_p2, %p2375_p0 }
 0x8c9   : > { %p2371_p13 = pneg %p2370_p1 }
 0x8cb   : > { %p2378_p6 = pnand %p2377_p3, %p2371_p13 }
 0x93a   : > { %v1578_v44 = vpop.xlane.xlu0 %1577 }
 0x93b   : > { %v1579_v45 = vsub.f32 %v1575_v41, %v1578_v44 }
 0x93d   : > { %v1580_v46 = vmul.f32 1.442695, %v1579_v45 }
 0x93e   : > { %v1588_v47 = vpop.permute.xlu0 %1587 }
 0x93f   : > { %2194 = vpow2.f32 %v1580_v46  ;;  %2049 = vmatpush3.msra.mxu0 %v1588_v47 }
 0x949   : > { %v2195_v49 = vpop.eup %2194 }
 0x94a   : > { %v1582_v1 = vsel %vm771_vm2, %v2195_v49, 0.0 }
 0x94b   : > { %1583 = vadd.xlane.f32.xlu1 %v1582_v1 }
 0x97a   : > { %v1492_v50 = vpop.f32.mrb[10].mxu0 }
 0x97b   : > { %v1496_v51 = vadd.f32 %v1492_v50, %v1255_v30  ;;  %v2042_v48 = vpop.f32.mrb[11].mxu0 }
 0x9d8   : > { %v1584_v52 = vpop.xlane.xlu1 %1583 }
 0x9d9   : > { %2196 = vrcp.f32 %v1584_v52 }
 0x9e3   : > { %v2197_v53 = vpop.eup %2196 }
 0x9e4   : > { %v1586_v54 = vmul.f32 %v2197_v53, %v2195_v49 }
 0x9e6   : > { %2051 = vmatmul.mubr.msk.f32.vlgmr.msra.gmra.mrb[12].mxu0 %vm771_vm2, %v1586_v54 }
 0xab9   : > { %v1659_v55 = vpop.f32.mrb[12].mxu0 }
 0xaba   : > { %v2052_v56 = vpop.f32.mrb[13].mxu0  ;;  %2056 = vmatmul.mubr.msk.f32.vlgmr.msra.gmra.mrb[14].mxu1 %vm771_vm2, %v1659_v55 }
 0xb8d   : > { %v1733_v57 = vpop.f32.mrb[14].mxu1 }
 0xb8e   : > { %v1737_v58 = vadd.f32 %v1733_v57, %v1496_v51  ;;  %v2057_v59 = vpop.f32.mrb[15].mxu1 }
 0xb90   : > { %v1738_v60 = vadd.f32 %v1737_v58, %v2796_v14 }
 0xb92   : > { %1739 = vst.msk [vmem:[%s508_s23] sm:$0xff] %vm524_vm1, %v1738_v60 }
 0xb93   : > { %2381 = shalt.err (!%p2378_p6)
}
 0xb94   : > { %s2382_s13 = scalar_lea.hbm %s2931_s14, 128  ;;  %s2386_s4 = scalar_lea.hbm %s3013_s12, 256 }
 0xb95   : > { %p2383_p10 = scmp.ne.s32.totalorder %s2931_s14, %s2382_s13  ;;  %p2387_p5 = scmp.lt.u32.totalorder %s2931_s14, %s3013_s12 }
 0xb96   : > { %p2388_p9 = scmp.lt.u32.totalorder %s2386_s4, %s2382_s13  ;;  %p2390_p4 = scmp.lt.u32.totalorder %s2382_s13, %s2931_s14 }
 0xb97   : > { %p2384_p11 = pnand %p2383_p10, %p3014_p12 }
 0xb98   : > { %p2389_p7 = por %p2388_p9, %p2387_p5 }
 0xb99   : > { %p2385_p8 = pneg %p2384_p11 }
 0xb9a   : > { %p2391_p1 = por %p2390_p4, %p2389_p7 }
 0xb9c   : > { %p2392_p13 = pnand %p2391_p1, %p2385_p8 }
 0xb9e   : > { %2395 = shalt.err (!%p2392_p13)
}
 0xb9f   : > { %2098 = dma.vmem_to_hbm [thread:$0]  (%p3014_p12), %s2933_s24, 128, %s2931_s14, %s1741_s25  }
 0xba0 PF: > { %s1766_s26 = sand.u32 1, %s2434_s19   ;;  %p3015_p0 = scmp.ne.s32.totalorder %s3003_s18, 0 }
 0xba1   : > { %p3016_p2 = scmp.ge.s32.totalorder %s2446_s22, 2  ;;  %s1767_s2 = scalar_lea.sflag [#allocation4], %s1766_s26 }
 0xba3   : > { %p2121_p3 = pnand %p3016_p2, %p3015_p0 }
 0xba5   : > { %2429 = dma.done.wait (!%p2121_p3), %s1767_s2, 128  }
 0xba6   : > { %2431 = vsyncadd (!%p2121_p3), %s1767_s2, 4294967168  ;;  %p28_p6 = scmp.ge.s32.totalorder %s2697_s29, 4   ;;  %s3017_s19 = smov %s2438_s20 }
 0xba7   : > { %s3018_s20 = smov %s2442_s21  ;;  %s3019_s21 = smov %s2709_s11 }
 0xba8   : > { %s3020_s22 = smov %s2697_s29  ;;  %30 = sbr.rel (!%p28_p6) target bundleno = 12 (0xc), region = 136 }
 0xbaf   :  { %1772 = vsyncpa [#allocation3], 1 }
 0xbb0   :  { %1774 = vsyncpa [#allocation3 + $0x1], 1 }
 0xbb1   :  { %1775 = vsyncpa [#allocation6], 1 }
 0xbb2   :  { %1776 = vsyncpa [#allocation9], 1 }
 0xbb3   :  { %1777 = vsyncpa [#allocation12], 1 }
 0xbb4   :  { %1778 = vsyncpa [#allocation4], 1 }
 0xbb5   :  { %1780 = vsyncpa [#allocation4 + $0x1], 1 }

</bundles_post_ra>
